<compile_context>
chip_gen: v7x
topology: tpu7x:2x2x1
jax: 0.10.0
libtpu: 0.0.40
codegen_flags: <defaults>
</compile_context>

<pallas_src>
import functools

import jax
import jax.numpy as jnp
from jax.experimental import pallas as pl
from jax.experimental.pallas import tpu as pltpu

_EPS = 1e-8                 # torch.nn.functional.cosine_similarity default eps
_EPS_SQ = _EPS * _EPS
_MIN_LANE_FEAT = 128        # below this, fall back to plain XLA
_LANES = 128


def _round_up(x: int, m: int) -> int:
    return ((x + m - 1) // m) * m


def _cdiv(a: int, b: int) -> int:
    return -(-a // b)


# ----------------------------------------------------------------------------
# Hardware-aware sizing helpers
# ----------------------------------------------------------------------------
def _tpu_vmem_capacity_bytes() -> int:
    try:
        return int(pltpu.get_tpu_info().vmem_capacity_bytes)
    except Exception:
        return 64 * 1024 * 1024       # conservative: v7x per-TC VMEM


def _vmem_input_budget_bytes() -> int:
    # Streaming working-set budget: generous on 128 MiB parts (v5e/v6e),
    # conservative on 64 MiB-per-TC parts (v7x).
    small = _tpu_vmem_capacity_bytes() <= 64 * 1024 * 1024
    return 24 * 1024 * 1024 if small else 64 * 1024 * 1024


def _vmem_limit_bytes() -> int:
    small = _tpu_vmem_capacity_bytes() <= 64 * 1024 * 1024
    return 48 * 1024 * 1024 if small else 96 * 1024 * 1024


def _has_packed_bf16_valu() -> bool:
    # v6e/v7x VPUs execute bf16 natively (2 elems/lane); v5e does not.
    try:
        kind = jax.devices()[0].device_kind.lower()
    except Exception:
        return False
    return ("v6" in kind) or ("v7" in kind)


def _pick_tile_rows(batch: int, feat: int, itemsize: int, n_streams: int = 2) -> int:
    """Largest batch tile whose pipelined footprint fits the VMEM budget."""
    mult = 16 if itemsize < 4 else 8              # bf16 packs 2 rows per sublane
    batch_r = _round_up(batch, mult)
    per_row = feat * itemsize
    rows = _vmem_input_budget_bytes() // (n_streams * 2 * per_row)  # streams x 2 buffers
    rows = max(mult, (rows // mult) * mult)
    rows = min(rows, batch_r)
    # v7x megacore load balance: prefer >= 4 tiles (2 per TensorCore) as long as
    # each tile keeps >= 256 rows (per-grid-step overhead ~0.35 us stays amortized).
    quarter = _round_up(_cdiv(batch_r, 4), mult)
    if quarter >= 256:
        rows = min(rows, quarter)
    return rows


# ----------------------------------------------------------------------------
# Forward kernel: one partial sum of per-row cosine similarities per tile
# ----------------------------------------------------------------------------
def _cos_partial_kernel(p_ref, z_ref, out_ref, *, tile_rows: int, batch: int,
                        low_precision: bool):
    i = pl.program_id(0)
    p = p_ref[...]
    z = z_ref[...]
    if not low_precision:
        # f32 products (v5e has no bf16 VALU; f32 inputs take this path too).
        p = p.astype(jnp.float32)
        z = z.astype(jnp.float32)

    # Products in the (possibly bf16) load dtype; accumulate rows in f32.
    dot = jnp.sum(p * z, axis=-1, keepdims=True, dtype=jnp.float32)   # (TB, 1)
    p_sq = jnp.sum(p * p, axis=-1, keepdims=True, dtype=jnp.float32)  # (TB, 1)
    z_sq = jnp.sum(z * z, axis=-1, keepdims=True, dtype=jnp.float32)  # (TB, 1)

    # 1 / (max(|p|, eps) * max(|z|, eps)) via a single EUP rsqrt.
    inv = jax.lax.rsqrt(jnp.maximum(p_sq, _EPS_SQ) * jnp.maximum(z_sq, _EPS_SQ))
    cos = dot * inv                                                   # (TB, 1)

    # Ragged-tile masking is statically elided when batch % tile_rows == 0.
    if batch % tile_rows != 0:
        row = jax.lax.broadcasted_iota(jnp.int32, cos.shape, 0)
        valid = (i * tile_rows + row) < batch
        cos = jnp.where(valid, cos, 0.0)

    partial = jnp.sum(cos, axis=0, keepdims=True)                     # (1, 1)
    # Lane-dense (1, 1, 128) store; the wrapper reads lane 0 of each tile.
    out_ref[...] = jnp.broadcast_to(partial, (1, 1, _LANES))


def _simsiam_forward(p: jax.Array, z: jax.Array, *, tile_rows: int | None = None,
                     low_precision: bool | None = None) -> jax.Array:
    assert p.shape == z.shape
    feat = p.shape[-1]
    # Cosine similarity is over the last axis; mean over everything else equals
    # the mean over flattened rows.
    p2 = p.reshape(-1, feat)
    z2 = z.reshape(-1, feat)
    batch = p2.shape[0]

    if feat < _MIN_LANE_FEAT or batch == 0:
        # Lane-sparse vregs; XLA's fused reduce is already optimal here.
        return _simsiam_loss_ref(p, z)

    itemsize = max(p2.dtype.itemsize, z2.dtype.itemsize)
    if low_precision is None:
        low_precision = (p2.dtype == jnp.bfloat16 and z2.dtype == jnp.bfloat16
                         and _has_packed_bf16_valu())
    if tile_rows is None:
        tile_rows = _pick_tile_rows(batch, feat, itemsize, n_streams=2)
    num_tiles = _cdiv(batch, tile_rows)

    kernel = functools.partial(_cos_partial_kernel, tile_rows=tile_rows,
                               batch=batch, low_precision=bool(low_precision))
    partials = pl.pallas_call(
        kernel,
        out_shape=jax.ShapeDtypeStruct((num_tiles, 1, _LANES), jnp.float32),
        grid_spec=pltpu.PrefetchScalarGridSpec(
            num_scalar_prefetch=0,
            grid=(num_tiles,),
            in_specs=[
                pl.BlockSpec((tile_rows, feat), lambda i: (i, 0)),
                pl.BlockSpec((tile_rows, feat), lambda i: (i, 0)),
            ],
            out_specs=pl.BlockSpec((1, 1, _LANES), lambda i: (i, 0, 0)),
        ),
        compiler_params=pltpu.CompilerParams(
            dimension_semantics=("parallel",),
            vmem_limit_bytes=_vmem_limit_bytes(),
        ),
    )(p2, z2)

    # Tiny epilogue: sum num_tiles scalars, divide by the TRUE batch, negate.
    return -(jnp.sum(partials[:, 0, 0]) / batch)


# ----------------------------------------------------------------------------
# Backward kernel: one streaming pass (read p, read z, write dp)
# ----------------------------------------------------------------------------
def _grad_tile_kernel(scale_ref, p_ref, z_ref, dp_ref):
    p = p_ref[...].astype(jnp.float32)
    z = z_ref[...].astype(jnp.float32)

    dot = jnp.sum(p * z, axis=-1, keepdims=True)     # (TB, 1)
    p_sq = jnp.sum(p * p, axis=-1, keepdims=True)
    z_sq = jnp.sum(z * z, axis=-1, keepdims=True)

    p_sq_c = jnp.maximum(p_sq, _EPS_SQ)
    z_sq_c = jnp.maximum(z_sq, _EPS_SQ)
    inv = jax.lax.rsqrt(p_sq_c * z_sq_c)             # 1/(max(|p|,eps)*max(|z|,eps))
    cos = dot * inv

    # d cos / dp = inv * z - cos * p / |p|^2 ; second term vanishes when |p| <= eps.
    coeff = jnp.where(p_sq > _EPS_SQ, cos / p_sq_c, 0.0)
    scale = scale_ref[0]                             # = -g / batch (SMEM scalar)
    dp_ref[...] = (scale * (inv * z - coeff * p)).astype(dp_ref.dtype)


def _simsiam_backward(p: jax.Array, z: jax.Array, g: jax.Array) -> jax.Array:
    feat = p.shape[-1]
    p2 = p.reshape(-1, feat)
    z2 = z.reshape(-1, feat)
    batch = p2.shape[0]

    if feat < _MIN_LANE_FEAT or batch == 0:
        _, vjp = jax.vjp(lambda pp: _simsiam_loss_ref(pp, z), p)
        (dp,) = vjp(g)
        return dp

    itemsize = max(p2.dtype.itemsize, z2.dtype.itemsize)
    tile_rows = _pick_tile_rows(batch, feat, itemsize, n_streams=3)  # p, z in; dp out
    num_tiles = _cdiv(batch, tile_rows)
    scale = jnp.asarray(-g, dtype=jnp.float32).reshape(1) / batch    # (1,) f32

    dp2 = pl.pallas_call(
        _grad_tile_kernel,
        out_shape=jax.ShapeDtypeStruct((batch, feat), p2.dtype),
        grid_spec=pltpu.PrefetchScalarGridSpec(
            num_scalar_prefetch=0,
            grid=(num_tiles,),
            in_specs=[
                pl.BlockSpec(memory_space=pltpu.MemorySpace.SMEM),   # scale scalar
                pl.BlockSpec((tile_rows, feat), lambda i: (i, 0)),
                pl.BlockSpec((tile_rows, feat), lambda i: (i, 0)),
            ],
            out_specs=pl.BlockSpec((tile_rows, feat), lambda i: (i, 0)),
        ),
        compiler_params=pltpu.CompilerParams(
            dimension_semantics=("parallel",),
            vmem_limit_bytes=_vmem_limit_bytes(),
        ),
    )(scale, p2, z2)
    return dp2.reshape(p.shape)


# ----------------------------------------------------------------------------
# Reference + custom_vjp wiring
# ----------------------------------------------------------------------------
def _simsiam_loss_ref(p: jax.Array, z: jax.Array) -> jax.Array:
    """Pure-JAX reference: -mean(cosine_similarity(p, stop_grad(z), dim=-1))."""
    p32 = p.astype(jnp.float32)
    z32 = jax.lax.stop_gradient(z).astype(jnp.float32)
    dot = jnp.sum(p32 * z32, axis=-1)
    pn = jnp.maximum(jnp.sqrt(jnp.sum(p32 * p32, axis=-1)), _EPS)
    zn = jnp.maximum(jnp.sqrt(jnp.sum(z32 * z32, axis=-1)), _EPS)
    return -jnp.mean(dot / (pn * zn))


@jax.custom_vjp
def simsiam_loss(p: jax.Array, z: jax.Array) -> jax.Array:
    """SimSiamLoss(simplified=True).forward(p, z) — z is detached."""
    return _simsiam_forward(p, z)


def _simsiam_fwd(p, z):
    return _simsiam_forward(p, z), (p, z)


def _simsiam_bwd(res, g):
    p, z = res
    # Gradient flows only to p; z is detached (z.detach() in the torch module).
    return _simsiam_backward(p, z, g), jnp.zeros_like(z)


simsiam_loss.defvjp(_simsiam_fwd, _simsiam_bwd)


if __name__ == "__main__":
    key = jax.random.PRNGKey(0)
    k1, k2, k3, k4 = jax.random.split(key, 4)

    # Case 1: f32, lane-dense feature dim, single tile (batch=8, hidden=256).
    B1, D1 = 8, 256
    p1 = jax.random.normal(k1, (B1, D1), dtype=jnp.float32)
    z1 = jax.random.normal(k2, (B1, D1), dtype=jnp.float32)
    loss1 = simsiam_loss(p1, z1)
    jax.block_until_ready(loss1)
    ref1 = _simsiam_loss_ref(p1, z1)
    assert jnp.allclose(loss1, ref1, atol=1e-5, rtol=1e-4), (loss1, ref1)

    # Case 2: bf16, multi-tile ragged grid, forced low-precision products
    # (batch=40, hidden=128, tile_rows=16 -> 3 tiles, masked last tile).
    B2, D2 = 40, 128
    p2 = jax.random.normal(k3, (B2, D2), dtype=jnp.float32).astype(jnp.bfloat16)
    z2 = jax.random.normal(k4, (B2, D2), dtype=jnp.float32).astype(jnp.bfloat16)
    loss2 = _simsiam_forward(p2, z2, tile_rows=16, low_precision=True)
    jax.block_until_ready(loss2)
    ref2 = _simsiam_loss_ref(p2, z2)
    assert jnp.allclose(loss2, ref2, atol=3e-3, rtol=3e-2), (loss2, ref2)

    # Case 3: fused Pallas backward vs autodiff of the pure-JAX reference.
    gp = jax.grad(simsiam_loss, argnums=0)(p1, z1)
    jax.block_until_ready(gp)
    gp_ref = jax.grad(lambda pp: _simsiam_loss_ref(pp, z1))(p1)
    assert jnp.allclose(gp, gp_ref, atol=1e-5, rtol=1e-4), (
        float(jnp.max(jnp.abs(gp - gp_ref))))

    # Case 4: tiny feature dim takes the pure-JAX fast path (hidden=32 < 128).
    p4 = jax.random.normal(k1, (8, 32), dtype=jnp.float32)
    z4 = jax.random.normal(k2, (8, 32), dtype=jnp.float32)
    loss4 = simsiam_loss(p4, z4)
    jax.block_until_ready(loss4)
    assert jnp.allclose(loss4, _simsiam_loss_ref(p4, z4), atol=1e-6)

    print("KERNEL_OK")
</pallas_src>

<mosaic_0001>
module attributes {stable_mosaic.version = 11 : i64} {
  func.func @_cos_partial_kernel(%arg0: i32, %arg1: memref<8x256xf32, #tpu.memory_space<vmem>>, %arg2: memref<8x256xf32, #tpu.memory_space<vmem>>, %arg3: memref<1x1x128xf32, #tpu.memory_space<vmem>>) attributes {dimension_semantics = [#tpu.dimension_semantics<parallel>], iteration_bounds = array<i64: 1>, scalar_prefetch = 0 : i64, scratch_operands = 0 : i64, tpu.core_type = #tpu.core_type<tc>, window_params = [{transform_indices = @transform_0, window_bounds = array<i64: 8, 256>}, {transform_indices = @transform_1, window_bounds = array<i64: 8, 256>}, {transform_indices = @transform_2, window_bounds = array<i64: 1, 1, 128>}]} {
    %c0 = arith.constant 0 : index
    %c0_0 = arith.constant 0 : index
    %0 = vector.load %arg1[%c0, %c0_0] : memref<8x256xf32, #tpu.memory_space<vmem>>, vector<8x256xf32>
    %c0_1 = arith.constant 0 : index
    %c0_2 = arith.constant 0 : index
    %1 = vector.load %arg2[%c0_1, %c0_2] : memref<8x256xf32, #tpu.memory_space<vmem>>, vector<8x256xf32>
    %2 = arith.mulf %0, %1 : vector<8x256xf32>
    %cst = arith.constant dense<0.000000e+00> : vector<8xf32>
    %3 = vector.multi_reduction <add>, %2, %cst [1] : vector<8x256xf32> to vector<8xf32>
    %4 = vector.shape_cast %3 : vector<8xf32> to vector<8x1xf32>
    %5 = arith.mulf %0, %0 : vector<8x256xf32>
    %cst_3 = arith.constant dense<0.000000e+00> : vector<8xf32>
    %6 = vector.multi_reduction <add>, %5, %cst_3 [1] : vector<8x256xf32> to vector<8xf32>
    %7 = vector.shape_cast %6 : vector<8xf32> to vector<8x1xf32>
    %8 = arith.mulf %1, %1 : vector<8x256xf32>
    %cst_4 = arith.constant dense<0.000000e+00> : vector<8xf32>
    %9 = vector.multi_reduction <add>, %8, %cst_4 [1] : vector<8x256xf32> to vector<8xf32>
    %10 = vector.shape_cast %9 : vector<8xf32> to vector<8x1xf32>
    %cst_5 = arith.constant 1.000000e-16 : f32
    %11 = vector.broadcast %cst_5 : f32 to vector<8x1xf32>
    %12 = arith.maximumf %7, %11 : vector<8x1xf32>
    %cst_6 = arith.constant 1.000000e-16 : f32
    %13 = vector.broadcast %cst_6 : f32 to vector<8x1xf32>
    %14 = arith.maximumf %10, %13 : vector<8x1xf32>
    %15 = arith.mulf %12, %14 : vector<8x1xf32>
    %16 = math.rsqrt %15 : vector<8x1xf32>
    %17 = arith.mulf %4, %16 : vector<8x1xf32>
    %cst_7 = arith.constant dense<0.000000e+00> : vector<1xf32>
    %18 = vector.multi_reduction <add>, %17, %cst_7 [0] : vector<8x1xf32> to vector<1xf32>
    %19 = vector.shape_cast %18 : vector<1xf32> to vector<1x1xf32>
    %20 = vector.shape_cast %19 : vector<1x1xf32> to vector<1x1x1xf32>
    %21 = vector.broadcast %20 : vector<1x1x1xf32> to vector<1x1x128xf32>
    %c0_8 = arith.constant 0 : index
    %c0_9 = arith.constant 0 : index
    %c0_10 = arith.constant 0 : index
    %22 = vector.load %arg3[%c0_8, %c0_9, %c0_10] : memref<1x1x128xf32, #tpu.memory_space<vmem>>, vector<1x1x128xf32>
    tpu.vector_store %arg3[%c0_8, %c0_9, %c0_10], %21 {strides = array<i32>} : memref<1x1x128xf32, #tpu.memory_space<vmem>>, vector<1x1x128xf32>,
    return
  }
  func.func @transform_0(%arg0: i32) -> (i32, i32) {
    %c0_i32 = arith.constant 0 : i32
    %c0_i32_0 = arith.constant 0 : i32
    return %arg0, %c0_i32 : i32, i32
  }
  func.func @transform_1(%arg0: i32) -> (i32, i32) {
    %c0_i32 = arith.constant 0 : i32
    %c0_i32_0 = arith.constant 0 : i32
    return %arg0, %c0_i32 : i32, i32
  }
  func.func @transform_2(%arg0: i32) -> (i32, i32, i32) {
    %c0_i32 = arith.constant 0 : i32
    %c0_i32_0 = arith.constant 0 : i32
    %c0_i32_1 = arith.constant 0 : i32
    return %arg0, %c0_i32, %c0_i32_0 : i32, i32, i32
  }
}

</mosaic_0001>

<bundles_post_ra>
// kernel: tpu_custom_call.1
= control target key start
LH: loop header
LB: loop body
LE: loop exit
PB: predicated region body
PF: predicated region fallthrough
CT: control target
= control target key end

     0   :  { %7 = vsyncpa [#allocation3], 0  ;;  %s214_s0 = inlined_call_operand.hbm [shape: f32[8,256], index: 0, kind: input, shape index: {}]   ;;  %s215_s1 = inlined_call_operand.hbm [shape: f32[8,256], index: 1, kind: input, shape index: {}]   ;;  %s216_s2 = inlined_call_operand.hbm [shape: f32[1,1,128], index: 2, kind: output, shape index: {}]  }
   0x1   :  { %8 = vsyncpa [#allocation6], 0 }
   0x2   :  { %9 = vsyncpa [#allocation4], 0  ;;  %s160_s9 = smov [#allocation2]   ;;  %s161_s11 = smov [#allocation5]  }
   0x3   :  { %s16_s10 = sshll.u32 %s160_s9, 4  ;;  %s26_s12 = sshll.u32 %s161_s11, 4  ;;  %s17_s10 = int_to_ptr.vmem [resolvable:$true] %s16_s10  ;;  %s27_s12 = int_to_ptr.vmem [resolvable:$true] %s26_s12 }
   0x4   :  { %s88_s15 = scalar_lea.hbm %s214_s0, 256 }
   0x5   :  { %p89_p0 = scmp.ne.s32.totalorder %s214_s0, %s88_s15  ;;  %p92_p1 = scmp.lt.u32.totalorder %s88_s15, %s214_s0 }
   0x7   :  { %p94_p2 = pnand %p92_p1, %p89_p0 }
   0x9   :  { %97 = shalt.err (!%p94_p2)
}
   0xa   :  { %s98_s20 = scalar_lea.vmem %s17_s10, 256  ;;  %p103_p4 = scmp.lt.s32.totalorder %s17_s10, %s17_s10 }
   0xb   :  { %p99_p3 = scmp.ne.s32.totalorder %s17_s10, %s98_s20  ;;  %p104_p5 = scmp.lt.s32.totalorder %s98_s20, %s98_s20 }
   0xd   :  { %p105_p6 = por %p104_p5, %p103_p4 }
   0xf   :  { %p106_p7 = pnand %p105_p6, %p99_p3 }
  0x11   :  { %109 = shalt.err (!%p106_p7)
}
  0x12   :  { %19 = dma.hbm_to_vmem [thread:$0]  %s214_s0, 256, %s17_s10, [#allocation3]  }
  0x13   :  { %s110_s25 = scalar_lea.hbm %s215_s1, 256 }
  0x14   :  { %p111_p8 = scmp.ne.s32.totalorder %s215_s1, %s110_s25  ;;  %p114_p9 = scmp.lt.u32.totalorder %s110_s25, %s215_s1 }
  0x16   :  { %p116_p10 = pnand %p114_p9, %p111_p8 }
  0x18   :  { %119 = shalt.err (!%p116_p10)
}
  0x19   :  { %s120_s30 = scalar_lea.vmem %s27_s12, 256  ;;  %p125_p12 = scmp.lt.s32.totalorder %s27_s12, %s27_s12 }
  0x1a   :  { %p121_p11 = scmp.ne.s32.totalorder %s27_s12, %s120_s30  ;;  %p126_p13 = scmp.lt.s32.totalorder %s120_s30, %s120_s30 }
  0x1c   :  { %p127_p0 = por %p126_p13, %p125_p12 }
  0x1e   :  { %p128_p1 = pnand %p127_p0, %p121_p11 }
  0x20   :  { %131 = shalt.err (!%p128_p1)
}
  0x21   :  { %29 = dma.hbm_to_vmem [thread:$0]  %s215_s1, 256, %s27_s12, [#allocation6]  }
  0x22   :  { %154 = dma.done.wait [#allocation3], 256  }
  0x23   :  { %155 = vsyncadd [#allocation3], 4294967040 }
  0x24   :  { %156 = dma.done.wait [#allocation6], 256  }
  0x25   :  { %157 = vsyncadd [#allocation6], 4294967040  ;;  %v36_v0 = vld [vmem:[#allocation2] sm:$0xff]  ;;  %v37_v1 = vld [vmem:[#allocation2 + $0x8] sm:$0xff]  ;;  %s162_s1 = smov [#allocation7]  }
  0x26   :  { %v38_v2 = vld [vmem:[#allocation5] sm:$0xff]  ;;  %v45_v3 = vmul.f32 %v36_v0, %v36_v0  ;;  %v46_v4 = vmul.f32 %v37_v1, %v37_v1  ;;  %v39_v5 = vld [vmem:[#allocation5 + $0x8] sm:$0xff]  ;;  %s73_s4 = sshll.u32 %s162_s1, 4  ;;  %s74_s4 = int_to_ptr.vmem [resolvable:$true] %s73_s4 }
  0x27   :  { %v50_v6 = vmul.f32 %v38_v2, %v38_v2  ;;  %v40_v7 = vmul.f32 %v38_v2, %v36_v0  ;;  %v51_v8 = vmul.f32 %v39_v5, %v39_v5  ;;  %v41_v9 = vmul.f32 %v39_v5, %v37_v1  ;;  %s132_s5 = scalar_lea.vmem %s74_s4, 16  ;;  %s136_s6 = scalar_lea.vmem %s74_s4, 32 }
  0x28   :  { %v47_v10 = vadd.f32 %v46_v4, %v45_v3  ;;  %p133_p2 = scmp.ne.s32.totalorder %s74_s4, %s132_s5  ;;  %p137_p3 = scmp.lt.s32.totalorder %s74_s4, %s74_s4 }
  0x29   :  { %v42_v11 = vadd.f32 %v41_v9, %v40_v7  ;;  %v52_v12 = vadd.f32 %v51_v8, %v50_v6  ;;  %p138_p4 = scmp.lt.s32.totalorder %s136_s6, %s132_s5 }
  0x2a   :  { %48 = vadd.xlane.f32.xlu0 %v47_v10 }
  0x2b   :  { %43 = vadd.xlane.f32.xlu1 %v42_v11  ;;  %p139_p5 = por %p138_p4, %p137_p3 }
  0x2d   :  { %p140_p6 = pnand %p139_p5, %p133_p2 }
  0x2e   :  { %53 = vadd.xlane.f32.xlu0 %v52_v12 }
  0xb7   :  { %v49_v13 = vpop.xlane.xlu0 %48 }
  0xb8   :  { %v55_v15 = vmax.f32 %v49_v13, 1e-16  ;;  %v44_v18 = vpop.xlane.xlu1 %43 }
  0xbb   :  { %v54_v14 = vpop.xlane.xlu0 %53 }
  0xbc   :  { %v56_v16 = vmax.f32 %v54_v14, 1e-16 }
  0xbe   :  { %v57_v17 = vmul.f32 %v56_v16, %v55_v15 }
  0xc0   :  { %86 = vrsqrt.f32 %v57_v17 }
  0xca   :  { %v87_v19 = vpop.eup %86 }
  0xcb   :  { %v59_v20 = vmul.f32 %v87_v19, %v44_v18 }
  0xcd   :  { %v60_v21 = vrot.slane %v59_v20, 4 }
  0xcf   :  { %v61_v22 = vadd.f32 %v60_v21, %v59_v20 }
  0xd1   :  { %v62_v23 = vrot.slane %v61_v22, 2 }
  0xd3   :  { %v63_v24 = vadd.f32 %v62_v23, %v61_v22 }
  0xd5   :  { %v64_v25 = vrot.slane %v63_v24, 1 }
  0xd7   :  { %v65_v26 = vadd.f32 %v64_v25, %v63_v24 }
  0xd9   :  { %66 = vst [vmem:[#allocation7] sm:$0x1] %v65_v26 }
  0xda   :  { %143 = shalt.err (!%p140_p6)
}
  0xdb   :  { %s144_s9 = scalar_lea.hbm %s216_s2, 16 }
  0xdc   :  { %p145_p7 = scmp.ne.s32.totalorder %s216_s2, %s144_s9  ;;  %p148_p8 = scmp.lt.u32.totalorder %s144_s9, %s216_s2 }
  0xde   :  { %p150_p9 = pnand %p148_p8, %p145_p7 }
  0xe0   :  { %153 = shalt.err (!%p150_p9)
}
  0xe1   :  { %76 = dma.vmem_to_hbm [thread:$0]  %s74_s4, 16, %s216_s2, [#allocation4]  }
  0xe2   :  { %158 = dma.done.wait [#allocation4], 16  }
  0xe3   :  { %159 = vsyncadd [#allocation4], 4294967280 }
  0xe4   :  { %80 = vsyncpa [#allocation3], 1 }
  0xe5   :  { %81 = vsyncpa [#allocation6], 1 }
  0xe6   :  { %82 = vsyncpa [#allocation4], 1 }

</bundles_post_ra>
